<compile_context>
chip_gen: v7x
topology: tpu7x:2x2x1
jax: 0.10.0
libtpu: 0.0.40
codegen_flags: <defaults>
</compile_context>

<pallas_src>
import math
import functools

import jax
import jax.numpy as jnp
import numpy as np
from jax import lax
from jax.experimental import pallas as pl
from jax.experimental.pallas import tpu as pltpu


# ---------------------------------------------------------------------------
# in-kernel helpers (all f32)
# ---------------------------------------------------------------------------

def _layer_norm(x, w, b, eps=1e-5):
    # x: (M, C), w/b: (1, C)  -- PyTorch nn.LayerNorm (biased variance)
    mean = jnp.mean(x, axis=-1, keepdims=True)
    xc = x - mean
    var = jnp.mean(xc * xc, axis=-1, keepdims=True)
    return xc * lax.rsqrt(var + eps) * w + b


def _gelu_exact(x):
    # PyTorch nn.GELU() default: exact erf formulation
    return 0.5 * x * (1.0 + lax.erf(x * (1.0 / math.sqrt(2.0))))


# ---------------------------------------------------------------------------
# Pallas kernels
# ---------------------------------------------------------------------------

def qkv_kernel(x_ref, ln1w_ref, ln1b_ref, wqkv_ref, bqkv_ref, o_ref):
    # LN1 + fused QKV projection.  x: (TM, C) f32, wqkv: (C, 3C) bf16.
    h = _layer_norm(x_ref[...], ln1w_ref[...], ln1b_ref[...])
    o_ref[...] = (
        jnp.dot(h.astype(jnp.bfloat16), wqkv_ref[...],
                preferred_element_type=jnp.float32)
        + bqkv_ref[...]
    )


def attn_kernel(q_ref, k_ref, v_ref, bias_ref, o_ref):
    # One (batch, head) pair per grid step.  q/k/v: (1, T, dh) bf16.
    q = q_ref[0]                       # (T, dh) bf16 (scale folded into wq)
    k = k_ref[0]
    v = v_ref[0]
    s = lax.dot_general(q, k, (((1,), (1,)), ((), ())),
                        preferred_element_type=jnp.float32)      # (T, T) f32
    s = s + bias_ref[...]              # additive causal mask (0 / -1e30)
    m = jnp.max(s, axis=-1, keepdims=True)
    e = jnp.exp(s - m)
    p = e / jnp.sum(e, axis=-1, keepdims=True)                   # f32 softmax
    o_ref[0] = jnp.dot(p.astype(jnp.bfloat16), v,
                       preferred_element_type=jnp.float32)       # (T, dh) f32


def mlp_kernel(x_ref, y_ref, wo_ref, bo_ref, ln2w_ref, ln2b_ref,
               w1_ref, b1_ref, w2_ref, b2_ref, o_ref):
    # attention output projection + residual + LN2 + MLP + residual.
    x = x_ref[...]                                                # (TM, C) f32
    att = (jnp.dot(y_ref[...].astype(jnp.bfloat16), wo_ref[...],
                   preferred_element_type=jnp.float32) + bo_ref[...])
    x = x + att                                                   # residual 1
    h = _layer_norm(x, ln2w_ref[...], ln2b_ref[...])
    mid = (jnp.dot(h.astype(jnp.bfloat16), w1_ref[...],
                   preferred_element_type=jnp.float32) + b1_ref[...])
    mid = _gelu_exact(mid)
    out = (jnp.dot(mid.astype(jnp.bfloat16), w2_ref[...],
                   preferred_element_type=jnp.float32) + b2_ref[...])
    o_ref[...] = x + out                                          # residual 2


def head_kernel(x_ref, lnw_ref, lnb_ref, wh_ref, o_ref, h_scratch):
    # final LN (hoisted, computed once per M-tile) + tiled vocab projection.
    @pl.when(pl.program_id(1) == 0)
    def _():
        h_scratch[...] = _layer_norm(
            x_ref[...], lnw_ref[...], lnb_ref[...]).astype(jnp.bfloat16)
    o_ref[...] = jnp.dot(h_scratch[...], wh_ref[...],
                         preferred_element_type=jnp.float32)


# ---------------------------------------------------------------------------
# wrappers
# ---------------------------------------------------------------------------

def _full_spec(a):
    nd = a.ndim
    return pl.BlockSpec(a.shape, lambda *_, _nd=nd: (0,) * _nd)


def _cparams(*sems):
    return pltpu.CompilerParams(
        dimension_semantics=tuple(sems),
        vmem_limit_bytes=48 * 1024 * 1024,
    )


def _tile_m(M, pref=256):
    if M <= pref:
        return M
    t = pref
    while t >= 8:
        if M % t == 0:
            return t
        t -= 8
    return M


def _tile_v(V, pref=512):
    if V % 128 != 0:
        return V
    t = min(pref, V)
    while V % t != 0:
        t -= 128
    return t


def run_qkv(x, lp):
    M, C = x.shape
    TM = _tile_m(M)
    return pl.pallas_call(
        qkv_kernel,
        out_shape=jax.ShapeDtypeStruct((M, 3 * C), jnp.float32),
        grid=(M // TM,),
        in_specs=[
            pl.BlockSpec((TM, C), lambda i: (i, 0)),
            _full_spec(lp['ln1_w']), _full_spec(lp['ln1_b']),
            _full_spec(lp['wqkv']), _full_spec(lp['bqkv']),
        ],
        out_specs=pl.BlockSpec((TM, 3 * C), lambda i: (i, 0)),
        compiler_params=_cparams("parallel"),
    )(x, lp['ln1_w'], lp['ln1_b'], lp['wqkv'], lp['bqkv'])


def run_attn(q, k, v, mask_bias):
    BH, T, dh = q.shape
    blk = pl.BlockSpec((1, T, dh), lambda i: (i, 0, 0))
    return pl.pallas_call(
        attn_kernel,
        out_shape=jax.ShapeDtypeStruct((BH, T, dh), jnp.float32),
        grid=(BH,),
        in_specs=[blk, blk, blk, _full_spec(mask_bias)],
        out_specs=pl.BlockSpec((1, T, dh), lambda i: (i, 0, 0)),
        compiler_params=_cparams("parallel"),
    )(q, k, v, mask_bias)


def run_mlp(x, y, lp):
    M, C = x.shape
    TM = _tile_m(M)
    return pl.pallas_call(
        mlp_kernel,
        out_shape=jax.ShapeDtypeStruct((M, C), jnp.float32),
        grid=(M // TM,),
        in_specs=[
            pl.BlockSpec((TM, C), lambda i: (i, 0)),
            pl.BlockSpec((TM, C), lambda i: (i, 0)),
            _full_spec(lp['wo']), _full_spec(lp['bo']),
            _full_spec(lp['ln2_w']), _full_spec(lp['ln2_b']),
            _full_spec(lp['w1']), _full_spec(lp['b1']),
            _full_spec(lp['w2']), _full_spec(lp['b2']),
        ],
        out_specs=pl.BlockSpec((TM, C), lambda i: (i, 0)),
        compiler_params=_cparams("parallel"),
    )(x, y, lp['wo'], lp['bo'], lp['ln2_w'], lp['ln2_b'],
      lp['w1'], lp['b1'], lp['w2'], lp['b2'])


def run_head(x, lnw, lnb, head_w):
    M, C = x.shape
    V = head_w.shape[1]
    TM = _tile_m(M)
    TV = _tile_v(V)
    return pl.pallas_call(
        head_kernel,
        out_shape=jax.ShapeDtypeStruct((M, V), jnp.float32),
        grid=(M // TM, V // TV),
        in_specs=[
            pl.BlockSpec((TM, C), lambda i, j: (i, 0)),
            _full_spec(lnw), _full_spec(lnb),
            pl.BlockSpec((C, TV), lambda i, j: (0, j)),
        ],
        out_specs=pl.BlockSpec((TM, TV), lambda i, j: (i, j)),
        scratch_shapes=[pltpu.VMEM((TM, C), jnp.bfloat16)],
        compiler_params=_cparams("parallel", "arbitrary"),
    )(x, lnw, lnb, head_w)


# ---------------------------------------------------------------------------
# head split / merge (host-side layout plumbing, cheap XLA transposes)
# ---------------------------------------------------------------------------

def _split_heads(qkv, B, T, n_head):
    C = qkv.shape[-1] // 3
    dh = C // n_head

    def f(t):
        return (t.reshape(B, T, n_head, dh)
                 .transpose(0, 2, 1, 3)
                 .reshape(B * n_head, T, dh)
                 .astype(jnp.bfloat16))

    return f(qkv[:, :C]), f(qkv[:, C:2 * C]), f(qkv[:, 2 * C:])


def _merge_heads(y, B, T, n_head):
    dh = y.shape[-1]
    return (y.reshape(B, n_head, T, dh)
             .transpose(0, 2, 1, 3)
             .reshape(B * T, n_head * dh))


# ---------------------------------------------------------------------------
# forward pass
# ---------------------------------------------------------------------------

def gpt_forward(idx, kp, n_head):
    # idx: (B, T) int32 token ids
    B, T = idx.shape
    C = kp['tok_emb'].shape[1]
    tok = jnp.take(kp['tok_emb'], idx, axis=0)                  # (B, T, C) gather (glue)
    x = (tok + kp['pos_emb'][:, :T, :]).reshape(B * T, C)       # eval dropout = identity

    # additive causal mask, computed once per forward
    mask_bias = jnp.where(jnp.tril(jnp.ones((T, T), dtype=bool)),
                          0.0, -1e30).astype(jnp.float32)

    for lp in kp['blocks']:
        qkv = run_qkv(x, lp)                                    # (M, 3C) f32
        q, k, v = _split_heads(qkv, B, T, n_head)               # (B*nh, T, dh) bf16
        y = run_attn(q, k, v, mask_bias)                        # (B*nh, T, dh) f32
        y = _merge_heads(y, B, T, n_head)                       # (M, C) f32
        x = run_mlp(x, y, lp)                                   # (M, C) f32

    logits = run_head(x, kp['lnf_w'], kp['lnf_b'], kp['head_w'])  # (M, V)
    return logits.reshape(B, T, -1)


# ---------------------------------------------------------------------------
# deterministic parameter init (mirrors GPT._init_weights) + kernel-layout prep
# ---------------------------------------------------------------------------

def init_params(key, vocab_size, block_size, n_embd, n_layer):
    C, H = n_embd, 4 * n_embd

    def normal(k, shape):
        return (0.02 * jax.random.normal(k, shape)).astype(jnp.float32)

    keys = jax.random.split(key, 2 + n_layer)
    params = {
        'tok_emb': normal(keys[0], (vocab_size, C)),
        'pos_emb': jnp.zeros((1, block_size, C), jnp.float32),
        'lnf_w': jnp.ones((1, C), jnp.float32),
        'lnf_b': jnp.zeros((1, C), jnp.float32),
        # nn.Linear(C, vocab) weight is (vocab, C); store transposed (C, vocab)
        'head_w': normal(keys[1], (vocab_size, C)).T,
        'blocks': [],
    }
    for l in range(n_layer):
        ks = jax.random.split(keys[2 + l], 6)
        lp = {
            'ln1_w': jnp.ones((1, C), jnp.float32), 'ln1_b': jnp.zeros((1, C), jnp.float32),
            'ln2_w': jnp.ones((1, C), jnp.float32), 'ln2_b': jnp.zeros((1, C), jnp.float32),
            # all linear weights stored pre-transposed to (in, out)
            'wq': normal(ks[0], (C, C)).T, 'bq': jnp.zeros((1, C), jnp.float32),
            'wk': normal(ks[1], (C, C)).T, 'bk': jnp.zeros((1, C), jnp.float32),
            'wv': normal(ks[2], (C, C)).T, 'bv': jnp.zeros((1, C), jnp.float32),
            'wo': normal(ks[3], (C, C)).T, 'bo': jnp.zeros((1, C), jnp.float32),
            'w1': normal(ks[4], (H, C)).T, 'b1': jnp.zeros((1, H), jnp.float32),
            'w2': normal(ks[5], (C, H)).T, 'b2': jnp.zeros((1, C), jnp.float32),
        }
        params['blocks'].append(lp)
    return params


def prep_kernel_params(params, n_head):
    """Fuse QKV, fold the attention scale into Wq/bq, cast weights to bf16."""
    C = params['tok_emb'].shape[1]
    dh = C // n_head
    scale = 1.0 / math.sqrt(dh)
    kp = {
        'tok_emb': params['tok_emb'],
        'pos_emb': params['pos_emb'],
        'lnf_w': params['lnf_w'], 'lnf_b': params['lnf_b'],
        'head_w': params['head_w'].astype(jnp.bfloat16),
        'blocks': [],
    }
    for lp in params['blocks']:
        wqkv = jnp.concatenate([lp['wq'] * scale, lp['wk'], lp['wv']], axis=1)
        bqkv = jnp.concatenate([lp['bq'] * scale, lp['bk'], lp['bv']], axis=1)
        kp['blocks'].append({
            'ln1_w': lp['ln1_w'], 'ln1_b': lp['ln1_b'],
            'wqkv': wqkv.astype(jnp.bfloat16), 'bqkv': bqkv.astype(jnp.float32),
            'wo': lp['wo'].astype(jnp.bfloat16), 'bo': lp['bo'],
            'ln2_w': lp['ln2_w'], 'ln2_b': lp['ln2_b'],
            'w1': lp['w1'].astype(jnp.bfloat16), 'b1': lp['b1'],
            'w2': lp['w2'].astype(jnp.bfloat16), 'b2': lp['b2'],
        })
    return kp


# ---------------------------------------------------------------------------
# pure-JAX f32 reference (faithful PyTorch math) for validation
# ---------------------------------------------------------------------------

def ref_forward(idx, params, n_head):
    B, T = idx.shape
    x = jnp.take(params['tok_emb'], idx, axis=0) + params['pos_emb'][:, :T, :]
    C = x.shape[-1]
    dh = C // n_head

    def ln(v, w, b):
        mean = v.mean(-1, keepdims=True)
        var = ((v - mean) ** 2).mean(-1, keepdims=True)
        return (v - mean) / jnp.sqrt(var + 1e-5) * w + b

    causal = jnp.tril(jnp.ones((T, T), bool))
    for lp in params['blocks']:
        h = ln(x, lp['ln1_w'][0], lp['ln1_b'][0])
        q = h @ lp['wq'] + lp['bq'][0]
        k = h @ lp['wk'] + lp['bk'][0]
        v = h @ lp['wv'] + lp['bv'][0]
        q = q.reshape(B, T, n_head, dh).transpose(0, 2, 1, 3)
        k = k.reshape(B, T, n_head, dh).transpose(0, 2, 1, 3)
        v = v.reshape(B, T, n_head, dh).transpose(0, 2, 1, 3)
        att = jnp.einsum('bhqd,bhkd->bhqk', q, k) / math.sqrt(dh)
        att = jnp.where(causal, att, -jnp.inf)
        att = jax.nn.softmax(att, axis=-1)
        y = jnp.einsum('bhqk,bhkd->bhqd', att, v).transpose(0, 2, 1, 3).reshape(B, T, C)
        x = x + (y @ lp['wo'] + lp['bo'][0])
        h2 = ln(x, lp['ln2_w'][0], lp['ln2_b'][0])
        m = h2 @ lp['w1'] + lp['b1'][0]
        m = 0.5 * m * (1.0 + lax.erf(m / math.sqrt(2.0)))
        x = x + (m @ lp['w2'] + lp['b2'][0])
    x = ln(x, params['lnf_w'][0], params['lnf_b'][0])
    return x @ params['head_w']


# ---------------------------------------------------------------------------
# main
# ---------------------------------------------------------------------------

if __name__ == "__main__":
    # small config
    vocab_size = 128
    block_size = 8
    n_embd = 32
    n_head = 4
    n_layer = 2
    B, T = 2, 8
    assert n_embd % n_head == 0

    key = jax.random.PRNGKey(0)
    pkey, ikey = jax.random.split(key)
    params = init_params(pkey, vocab_size, block_size, n_embd, n_layer)
    kparams = prep_kernel_params(params, n_head)
    idx = jax.random.randint(ikey, (B, T), 0, vocab_size, dtype=jnp.int32)

    fwd = jax.jit(functools.partial(gpt_forward, n_head=n_head))
    logits = jax.block_until_ready(fwd(idx, kparams))
    assert logits.shape == (B, T, vocab_size)

    ref = jax.block_until_ready(ref_forward(idx, params, n_head))
    # bf16 MXU operands (f32 accumulation, f32 LN/softmax/residuals) -> relax tol
    np.testing.assert_allclose(np.asarray(logits), np.asarray(ref), rtol=2e-2, atol=2e-2)

    print("KERNEL_OK")
</pallas_src>

<mosaic_0001>
module attributes {stable_mosaic.version = 11 : i64} {
  func.func @attn_kernel(%arg0: i32, %arg1: memref<1x8x8xbf16, #tpu.memory_space<vmem>>, %arg2: memref<1x8x8xbf16, #tpu.memory_space<vmem>>, %arg3: memref<1x8x8xbf16, #tpu.memory_space<vmem>>, %arg4: memref<8x8xf32, #tpu.memory_space<vmem>>, %arg5: memref<1x8x8xf32, #tpu.memory_space<vmem>>) attributes {dimension_semantics = [#tpu.dimension_semantics<parallel>], iteration_bounds = array<i64: 8>, scalar_prefetch = 0 : i64, scratch_operands = 0 : i64, tpu.core_type = #tpu.core_type<tc>, window_params = [{transform_indices = @transform_0, window_bounds = array<i64: 1, 8, 8>}, {transform_indices = @transform_1, window_bounds = array<i64: 1, 8, 8>}, {transform_indices = @transform_2, window_bounds = array<i64: 1, 8, 8>}, {pipeline_mode = #tpu.pipeline_mode<synchronous>, transform_indices = @transform_3, window_bounds = array<i64: 8, 8>}, {transform_indices = @transform_4, window_bounds = array<i64: 1, 8, 8>}]} {
    %c0 = arith.constant 0 : index
    %c0_0 = arith.constant 0 : index
    %c0_1 = arith.constant 0 : index
    %0 = vector.load %arg1[%c0, %c0_0, %c0_1] : memref<1x8x8xbf16, #tpu.memory_space<vmem>>, vector<1x8x8xbf16>
    %1 = vector.shape_cast %0 : vector<1x8x8xbf16> to vector<8x8xbf16>
    %c0_2 = arith.constant 0 : index
    %c0_3 = arith.constant 0 : index
    %c0_4 = arith.constant 0 : index
    %2 = vector.load %arg2[%c0_2, %c0_3, %c0_4] : memref<1x8x8xbf16, #tpu.memory_space<vmem>>, vector<1x8x8xbf16>
    %3 = vector.shape_cast %2 : vector<1x8x8xbf16> to vector<8x8xbf16>
    %c0_5 = arith.constant 0 : index
    %c0_6 = arith.constant 0 : index
    %c0_7 = arith.constant 0 : index
    %4 = vector.load %arg3[%c0_5, %c0_6, %c0_7] : memref<1x8x8xbf16, #tpu.memory_space<vmem>>, vector<1x8x8xbf16>
    %5 = vector.shape_cast %4 : vector<1x8x8xbf16> to vector<8x8xbf16>
    %cst = arith.constant dense<0.000000e+00> : vector<8x8xf32>
    %6 = tpu.matmul %1, %3, %cst {dimension_numbers = #tpu.dot_dimension_numbers<[1], [1], [0], [0], [0, 0, 1, 0], [], []>} : vector<8x8xbf16>, vector<8x8xbf16>, vector<8x8xf32> -> vector<8x8xf32>
    %c0_8 = arith.constant 0 : index
    %c0_9 = arith.constant 0 : index
    %7 = vector.load %arg4[%c0_8, %c0_9] : memref<8x8xf32, #tpu.memory_space<vmem>>, vector<8x8xf32>
    %8 = arith.addf %6, %7 : vector<8x8xf32>
    %cst_10 = arith.constant dense<0xFF800000> : vector<8xf32>
    %9 = vector.multi_reduction <maximumf>, %8, %cst_10 [1] : vector<8x8xf32> to vector<8xf32>
    %10 = vector.shape_cast %9 : vector<8xf32> to vector<8x1xf32>
    %11 = vector.broadcast %10 : vector<8x1xf32> to vector<8x8xf32>
    %12 = arith.subf %8, %11 : vector<8x8xf32>
    %13 = math.exp %12 : vector<8x8xf32>
    %cst_11 = arith.constant dense<0.000000e+00> : vector<8xf32>
    %14 = vector.multi_reduction <add>, %13, %cst_11 [1] : vector<8x8xf32> to vector<8xf32>
    %15 = vector.shape_cast %14 : vector<8xf32> to vector<8x1xf32>
    %16 = vector.broadcast %15 : vector<8x1xf32> to vector<8x8xf32>
    %17 = arith.divf %13, %16 : vector<8x8xf32>
    %18 = arith.truncf %17 : vector<8x8xf32> to vector<8x8xbf16>
    %cst_12 = arith.constant dense<0.000000e+00> : vector<8x8xf32>
    %19 = tpu.matmul %18, %5, %cst_12 {dimension_numbers = #tpu.dot_dimension_numbers<[1], [0], [0], [1], [0, 0, 1, 1], [], []>} : vector<8x8xbf16>, vector<8x8xbf16>, vector<8x8xf32> -> vector<8x8xf32>
    %c0_13 = arith.constant 0 : index
    %c0_14 = arith.constant 0 : index
    %c0_15 = arith.constant 0 : index
    %20 = vector.load %arg5[%c0_13, %c0_14, %c0_15] : memref<1x8x8xf32, #tpu.memory_space<vmem>>, vector<1x8x8xf32>
    %21 = vector.shape_cast %20 : vector<1x8x8xf32> to vector<8x8xf32>
    %22 = vector.shape_cast %19 : vector<8x8xf32> to vector<1x8x8xf32>
    tpu.vector_store %arg5[%c0_13, %c0_14, %c0_15], %22 {strides = array<i32>} : memref<1x8x8xf32, #tpu.memory_space<vmem>>, vector<1x8x8xf32>,
    return
  }
  func.func @transform_0(%arg0: i32) -> (i32, i32, i32) {
    %c0_i32 = arith.constant 0 : i32
    %c0_i32_0 = arith.constant 0 : i32
    %c0_i32_1 = arith.constant 0 : i32
    return %arg0, %c0_i32, %c0_i32_0 : i32, i32, i32
  }
  func.func @transform_1(%arg0: i32) -> (i32, i32, i32) {
    %c0_i32 = arith.constant 0 : i32
    %c0_i32_0 = arith.constant 0 : i32
    %c0_i32_1 = arith.constant 0 : i32
    return %arg0, %c0_i32, %c0_i32_0 : i32, i32, i32
  }
  func.func @transform_2(%arg0: i32) -> (i32, i32, i32) {
    %c0_i32 = arith.constant 0 : i32
    %c0_i32_0 = arith.constant 0 : i32
    %c0_i32_1 = arith.constant 0 : i32
    return %arg0, %c0_i32, %c0_i32_0 : i32, i32, i32
  }
  func.func @transform_3(%arg0: i32) -> (i32, i32) {
    %c0_i32 = arith.constant 0 : i32
    %c0_i32_0 = arith.constant 0 : i32
    %c0_i32_1 = arith.constant 0 : i32
    return %c0_i32, %c0_i32_0 : i32, i32
  }
  func.func @transform_4(%arg0: i32) -> (i32, i32, i32) {
    %c0_i32 = arith.constant 0 : i32
    %c0_i32_0 = arith.constant 0 : i32
    %c0_i32_1 = arith.constant 0 : i32
    return %arg0, %c0_i32, %c0_i32_0 : i32, i32, i32
  }
}

module attributes {stable_mosaic.version = 11 : i64} {
  func.func @qkv_kernel(%arg0: i32, %arg1: memref<16x32xf32, #tpu.memory_space<vmem>>, %arg2: memref<1x32xf32, #tpu.memory_space<vmem>>, %arg3: memref<1x32xf32, #tpu.memory_space<vmem>>, %arg4: memref<32x96xbf16, #tpu.memory_space<vmem>>, %arg5: memref<1x96xf32, #tpu.memory_space<vmem>>, %arg6: memref<16x96xf32, #tpu.memory_space<vmem>>) attributes {dimension_semantics = [#tpu.dimension_semantics<parallel>], iteration_bounds = array<i64: 1>, scalar_prefetch = 0 : i64, scratch_operands = 0 : i64, tpu.core_type = #tpu.core_type<tc>, window_params = [{transform_indices = @transform_0, window_bounds = array<i64: 16, 32>}, {pipeline_mode = #tpu.pipeline_mode<synchronous>, transform_indices = @transform_1, window_bounds = array<i64: 1, 32>}, {pipeline_mode = #tpu.pipeline_mode<synchronous>, transform_indices = @transform_2, window_bounds = array<i64: 1, 32>}, {pipeline_mode = #tpu.pipeline_mode<synchronous>, transform_indices = @transform_3, window_bounds = array<i64: 32, 96>}, {pipeline_mode = #tpu.pipeline_mode<synchronous>, transform_indices = @transform_4, window_bounds = array<i64: 1, 96>}, {transform_indices = @transform_5, window_bounds = array<i64: 16, 96>}]} {
    %c0 = arith.constant 0 : index
    %c0_0 = arith.constant 0 : index
    %0 = vector.load %arg1[%c0, %c0_0] : memref<16x32xf32, #tpu.memory_space<vmem>>, vector<16x32xf32>
    %c0_1 = arith.constant 0 : index
    %c0_2 = arith.constant 0 : index
    %1 = vector.load %arg2[%c0_1, %c0_2] : memref<1x32xf32, #tpu.memory_space<vmem>>, vector<1x32xf32>
    %c0_3 = arith.constant 0 : index
    %c0_4 = arith.constant 0 : index
    %2 = vector.load %arg3[%c0_3, %c0_4] : memref<1x32xf32, #tpu.memory_space<vmem>>, vector<1x32xf32>
    %cst = arith.constant dense<0.000000e+00> : vector<16xf32>
    %3 = vector.multi_reduction <add>, %0, %cst [1] : vector<16x32xf32> to vector<16xf32>
    %4 = vector.shape_cast %3 : vector<16xf32> to vector<16x1xf32>
    %cst_5 = arith.constant 3.200000e+01 : f32
    %5 = vector.broadcast %cst_5 : f32 to vector<16x1xf32>
    %6 = arith.divf %4, %5 : vector<16x1xf32>
    %7 = vector.broadcast %6 : vector<16x1xf32> to vector<16x32xf32>
    %8 = arith.subf %0, %7 : vector<16x32xf32>
    %9 = arith.mulf %8, %8 : vector<16x32xf32>
    %cst_6 = arith.constant dense<0.000000e+00> : vector<16xf32>
    %10 = vector.multi_reduction <add>, %9, %cst_6 [1] : vector<16x32xf32> to vector<16xf32>
    %11 = vector.shape_cast %10 : vector<16xf32> to vector<16x1xf32>
    %cst_7 = arith.constant 3.200000e+01 : f32
    %12 = vector.broadcast %cst_7 : f32 to vector<16x1xf32>
    %13 = arith.divf %11, %12 : vector<16x1xf32>
    %cst_8 = arith.constant 9.99999974E-6 : f32
    %14 = vector.broadcast %cst_8 : f32 to vector<16x1xf32>
    %15 = arith.addf %13, %14 : vector<16x1xf32>
    %16 = math.rsqrt %15 : vector<16x1xf32>
    %17 = vector.broadcast %16 : vector<16x1xf32> to vector<16x32xf32>
    %18 = arith.mulf %8, %17 : vector<16x32xf32>
    %19 = vector.broadcast %1 : vector<1x32xf32> to vector<16x32xf32>
    %20 = arith.mulf %18, %19 : vector<16x32xf32>
    %21 = vector.broadcast %2 : vector<1x32xf32> to vector<16x32xf32>
    %22 = arith.addf %20, %21 : vector<16x32xf32>
    %23 = arith.truncf %22 : vector<16x32xf32> to vector<16x32xbf16>
    %c0_9 = arith.constant 0 : index
    %c0_10 = arith.constant 0 : index
    %24 = vector.load %arg4[%c0_9, %c0_10] : memref<32x96xbf16, #tpu.memory_space<vmem>>, vector<32x96xbf16>
    %cst_11 = arith.constant dense<0.000000e+00> : vector<16x96xf32>
    %25 = tpu.matmul %23, %24, %cst_11 {dimension_numbers = #tpu.dot_dimension_numbers<[1], [0], [0], [1], [0, 0, 1, 1], [], []>} : vector<16x32xbf16>, vector<32x96xbf16>, vector<16x96xf32> -> vector<16x96xf32>
    %c0_12 = arith.constant 0 : index
    %c0_13 = arith.constant 0 : index
    %26 = vector.load %arg5[%c0_12, %c0_13] : memref<1x96xf32, #tpu.memory_space<vmem>>, vector<1x96xf32>
    %27 = vector.broadcast %26 : vector<1x96xf32> to vector<16x96xf32>
    %28 = arith.addf %25, %27 : vector<16x96xf32>
    %c0_14 = arith.constant 0 : index
    %c0_15 = arith.constant 0 : index
    %29 = vector.load %arg6[%c0_14, %c0_15] : memref<16x96xf32, #tpu.memory_space<vmem>>, vector<16x96xf32>
    tpu.vector_store %arg6[%c0_14, %c0_15], %28 {strides = array<i32>} : memref<16x96xf32, #tpu.memory_space<vmem>>, vector<16x96xf32>,
    return
  }
  func.func @transform_0(%arg0: i32) -> (i32, i32) {
    %c0_i32 = arith.constant 0 : i32
    %c0_i32_0 = arith.constant 0 : i32
    return %arg0, %c0_i32 : i32, i32
  }
  func.func @transform_1(%arg0: i32) -> (i32, i32) {
    %c0_i32 = arith.constant 0 : i32
    %c0_i32_0 = arith.constant 0 : i32
    %c0_i32_1 = arith.constant 0 : i32
    return %c0_i32, %c0_i32_0 : i32, i32
  }
  func.func @transform_2(%arg0: i32) -> (i32, i32) {
    %c0_i32 = arith.constant 0 : i32
    %c0_i32_0 = arith.constant 0 : i32
    %c0_i32_1 = arith.constant 0 : i32
    return %c0_i32, %c0_i32_0 : i32, i32
  }
  func.func @transform_3(%arg0: i32) -> (i32, i32) {
    %c0_i32 = arith.constant 0 : i32
    %c0_i32_0 = arith.constant 0 : i32
    %c0_i32_1 = arith.constant 0 : i32
    return %c0_i32, %c0_i32_0 : i32, i32
  }
  func.func @transform_4(%arg0: i32) -> (i32, i32) {
    %c0_i32 = arith.constant 0 : i32
    %c0_i32_0 = arith.constant 0 : i32
    %c0_i32_1 = arith.constant 0 : i32
    return %c0_i32, %c0_i32_0 : i32, i32
  }
  func.func @transform_5(%arg0: i32) -> (i32, i32) {
    %c0_i32 = arith.constant 0 : i32
    %c0_i32_0 = arith.constant 0 : i32
    return %arg0, %c0_i32 : i32, i32
  }
}

module attributes {stable_mosaic.version = 11 : i64} {
  func.func @head_kernel(%arg0: i32, %arg1: i32, %arg2: memref<16x32xf32, #tpu.memory_space<vmem>>, %arg3: memref<1x32xf32, #tpu.memory_space<vmem>>, %arg4: memref<1x32xf32, #tpu.memory_space<vmem>>, %arg5: memref<32x128xbf16, #tpu.memory_space<vmem>>, %arg6: memref<16x128xf32, #tpu.memory_space<vmem>>, %arg7: memref<16x32xbf16, #tpu.memory_space<vmem>>) attributes {dimension_semantics = [#tpu.dimension_semantics<parallel>, #tpu.dimension_semantics<arbitrary>], iteration_bounds = array<i64: 1, 1>, scalar_prefetch = 0 : i64, scratch_operands = 1 : i64, tpu.core_type = #tpu.core_type<tc>, window_params = [{transform_indices = @transform_0, window_bounds = array<i64: 16, 32>}, {pipeline_mode = #tpu.pipeline_mode<synchronous>, transform_indices = @transform_1, window_bounds = array<i64: 1, 32>}, {pipeline_mode = #tpu.pipeline_mode<synchronous>, transform_indices = @transform_2, window_bounds = array<i64: 1, 32>}, {transform_indices = @transform_3, window_bounds = array<i64: 32, 128>}, {transform_indices = @transform_4, window_bounds = array<i64: 16, 128>}]} {
    %c0_i32 = arith.constant 0 : i32
    %0 = arith.cmpi eq, %arg1, %c0_i32 : i32
    %1 = arith.extui %0 : i1 to i32
    %c0_i32_0 = arith.constant 0 : i32
    %2 = arith.cmpi ne, %1, %c0_i32_0 : i32
    scf.if %2 {
      %c0_6 = arith.constant 0 : index
      %c0_7 = arith.constant 0 : index
      %7 = vector.load %arg2[%c0_6, %c0_7] : memref<16x32xf32, #tpu.memory_space<vmem>>, vector<16x32xf32>
      %c0_8 = arith.constant 0 : index
      %c0_9 = arith.constant 0 : index
      %8 = vector.load %arg3[%c0_8, %c0_9] : memref<1x32xf32, #tpu.memory_space<vmem>>, vector<1x32xf32>
      %c0_10 = arith.constant 0 : index
      %c0_11 = arith.constant 0 : index
      %9 = vector.load %arg4[%c0_10, %c0_11] : memref<1x32xf32, #tpu.memory_space<vmem>>, vector<1x32xf32>
      %cst_12 = arith.constant dense<0.000000e+00> : vector<16xf32>
      %10 = vector.multi_reduction <add>, %7, %cst_12 [1] : vector<16x32xf32> to vector<16xf32>
      %11 = vector.shape_cast %10 : vector<16xf32> to vector<16x1xf32>
      %cst_13 = arith.constant 3.200000e+01 : f32
      %12 = vector.broadcast %cst_13 : f32 to vector<16x1xf32>
      %13 = arith.divf %11, %12 : vector<16x1xf32>
      %14 = vector.broadcast %13 : vector<16x1xf32> to vector<16x32xf32>
      %15 = arith.subf %7, %14 : vector<16x32xf32>
      %16 = arith.mulf %15, %15 : vector<16x32xf32>
      %cst_14 = arith.constant dense<0.000000e+00> : vector<16xf32>
      %17 = vector.multi_reduction <add>, %16, %cst_14 [1] : vector<16x32xf32> to vector<16xf32>
      %18 = vector.shape_cast %17 : vector<16xf32> to vector<16x1xf32>
      %cst_15 = arith.constant 3.200000e+01 : f32
      %19 = vector.broadcast %cst_15 : f32 to vector<16x1xf32>
      %20 = arith.divf %18, %19 : vector<16x1xf32>
      %cst_16 = arith.constant 9.99999974E-6 : f32
      %21 = vector.broadcast %cst_16 : f32 to vector<16x1xf32>
      %22 = arith.addf %20, %21 : vector<16x1xf32>
      %23 = math.rsqrt %22 : vector<16x1xf32>
      %24 = vector.broadcast %23 : vector<16x1xf32> to vector<16x32xf32>
      %25 = arith.mulf %15, %24 : vector<16x32xf32>
      %26 = vector.broadcast %8 : vector<1x32xf32> to vector<16x32xf32>
      %27 = arith.mulf %25, %26 : vector<16x32xf32>
      %28 = vector.broadcast %9 : vector<1x32xf32> to vector<16x32xf32>
      %29 = arith.addf %27, %28 : vector<16x32xf32>
      %30 = arith.truncf %29 : vector<16x32xf32> to vector<16x32xbf16>
      %c0_17 = arith.constant 0 : index
      %c0_18 = arith.constant 0 : index
      %31 = vector.load %arg7[%c0_17, %c0_18] : memref<16x32xbf16, #tpu.memory_space<vmem>>, vector<16x32xbf16>
      tpu.vector_store %arg7[%c0_17, %c0_18], %30 {strides = array<i32>} : memref<16x32xbf16, #tpu.memory_space<vmem>>, vector<16x32xbf16>,
    } else {
    }
    %c0 = arith.constant 0 : index
    %c0_1 = arith.constant 0 : index
    %3 = vector.load %arg7[%c0, %c0_1] : memref<16x32xbf16, #tpu.memory_space<vmem>>, vector<16x32xbf16>
    %c0_2 = arith.constant 0 : index
    %c0_3 = arith.constant 0 : index
    %4 = vector.load %arg5[%c0_2, %c0_3] : memref<32x128xbf16, #tpu.memory_space<vmem>>, vector<32x128xbf16>
    %cst = arith.constant dense<0.000000e+00> : vector<16x128xf32>
    %5 = tpu.matmul %3, %4, %cst {dimension_numbers = #tpu.dot_dimension_numbers<[1], [0], [0], [1], [0, 0, 1, 1], [], []>} : vector<16x32xbf16>, vector<32x128xbf16>, vector<16x128xf32> -> vector<16x128xf32>
    %c0_4 = arith.constant 0 : index
    %c0_5 = arith.constant 0 : index
    %6 = vector.load %arg6[%c0_4, %c0_5] : memref<16x128xf32, #tpu.memory_space<vmem>>, vector<16x128xf32>
    tpu.vector_store %arg6[%c0_4, %c0_5], %5 {strides = array<i32>} : memref<16x128xf32, #tpu.memory_space<vmem>>, vector<16x128xf32>,
    return
  }
  func.func @transform_0(%arg0: i32, %arg1: i32) -> (i32, i32) {
    %c0_i32 = arith.constant 0 : i32
    %c0_i32_0 = arith.constant 0 : i32
    return %arg0, %c0_i32 : i32, i32
  }
  func.func @transform_1(%arg0: i32, %arg1: i32) -> (i32, i32) {
    %c0_i32 = arith.constant 0 : i32
    %c0_i32_0 = arith.constant 0 : i32
    %c0_i32_1 = arith.constant 0 : i32
    return %c0_i32, %c0_i32_0 : i32, i32
  }
  func.func @transform_2(%arg0: i32, %arg1: i32) -> (i32, i32) {
    %c0_i32 = arith.constant 0 : i32
    %c0_i32_0 = arith.constant 0 : i32
    %c0_i32_1 = arith.constant 0 : i32
    return %c0_i32, %c0_i32_0 : i32, i32
  }
  func.func @transform_3(%arg0: i32, %arg1: i32) -> (i32, i32) {
    %c0_i32 = arith.constant 0 : i32
    %c0_i32_0 = arith.constant 0 : i32
    return %c0_i32, %arg1 : i32, i32
  }
  func.func @transform_4(%arg0: i32, %arg1: i32) -> (i32, i32) {
    %c0_i32 = arith.constant 0 : i32
    return %arg0, %arg1 : i32, i32
  }
}

module attributes {stable_mosaic.version = 11 : i64} {
  func.func @mlp_kernel(%arg0: i32, %arg1: memref<16x32xf32, #tpu.memory_space<vmem>>, %arg2: memref<16x32xf32, #tpu.memory_space<vmem>>, %arg3: memref<32x32xbf16, #tpu.memory_space<vmem>>, %arg4: memref<1x32xf32, #tpu.memory_space<vmem>>, %arg5: memref<1x32xf32, #tpu.memory_space<vmem>>, %arg6: memref<1x32xf32, #tpu.memory_space<vmem>>, %arg7: memref<32x128xbf16, #tpu.memory_space<vmem>>, %arg8: memref<1x128xf32, #tpu.memory_space<vmem>>, %arg9: memref<128x32xbf16, #tpu.memory_space<vmem>>, %arg10: memref<1x32xf32, #tpu.memory_space<vmem>>, %arg11: memref<16x32xf32, #tpu.memory_space<vmem>>) attributes {dimension_semantics = [#tpu.dimension_semantics<parallel>], iteration_bounds = array<i64: 1>, scalar_prefetch = 0 : i64, scratch_operands = 0 : i64, tpu.core_type = #tpu.core_type<tc>, window_params = [{transform_indices = @transform_0, window_bounds = array<i64: 16, 32>}, {transform_indices = @transform_1, window_bounds = array<i64: 16, 32>}, {pipeline_mode = #tpu.pipeline_mode<synchronous>, transform_indices = @transform_2, window_bounds = array<i64: 32, 32>}, {pipeline_mode = #tpu.pipeline_mode<synchronous>, transform_indices = @transform_3, window_bounds = array<i64: 1, 32>}, {pipeline_mode = #tpu.pipeline_mode<synchronous>, transform_indices = @transform_4, window_bounds = array<i64: 1, 32>}, {pipeline_mode = #tpu.pipeline_mode<synchronous>, transform_indices = @transform_5, window_bounds = array<i64: 1, 32>}, {pipeline_mode = #tpu.pipeline_mode<synchronous>, transform_indices = @transform_6, window_bounds = array<i64: 32, 128>}, {pipeline_mode = #tpu.pipeline_mode<synchronous>, transform_indices = @transform_7, window_bounds = array<i64: 1, 128>}, {pipeline_mode = #tpu.pipeline_mode<synchronous>, transform_indices = @transform_8, window_bounds = array<i64: 128, 32>}, {pipeline_mode = #tpu.pipeline_mode<synchronous>, transform_indices = @transform_9, window_bounds = array<i64: 1, 32>}, {transform_indices = @transform_10, window_bounds = array<i64: 16, 32>}]} {
    %c0 = arith.constant 0 : index
    %c0_0 = arith.constant 0 : index
    %0 = vector.load %arg1[%c0, %c0_0] : memref<16x32xf32, #tpu.memory_space<vmem>>, vector<16x32xf32>
    %c0_1 = arith.constant 0 : index
    %c0_2 = arith.constant 0 : index
    %1 = vector.load %arg2[%c0_1, %c0_2] : memref<16x32xf32, #tpu.memory_space<vmem>>, vector<16x32xf32>
    %2 = arith.truncf %1 : vector<16x32xf32> to vector<16x32xbf16>
    %c0_3 = arith.constant 0 : index
    %c0_4 = arith.constant 0 : index
    %3 = vector.load %arg3[%c0_3, %c0_4] : memref<32x32xbf16, #tpu.memory_space<vmem>>, vector<32x32xbf16>
    %cst = arith.constant dense<0.000000e+00> : vector<16x32xf32>
    %4 = tpu.matmul %2, %3, %cst {dimension_numbers = #tpu.dot_dimension_numbers<[1], [0], [0], [1], [0, 0, 1, 1], [], []>} : vector<16x32xbf16>, vector<32x32xbf16>, vector<16x32xf32> -> vector<16x32xf32>
    %c0_5 = arith.constant 0 : index
    %c0_6 = arith.constant 0 : index
    %5 = vector.load %arg4[%c0_5, %c0_6] : memref<1x32xf32, #tpu.memory_space<vmem>>, vector<1x32xf32>
    %6 = vector.broadcast %5 : vector<1x32xf32> to vector<16x32xf32>
    %7 = arith.addf %4, %6 : vector<16x32xf32>
    %8 = arith.addf %0, %7 : vector<16x32xf32>
    %c0_7 = arith.constant 0 : index
    %c0_8 = arith.constant 0 : index
    %9 = vector.load %arg5[%c0_7, %c0_8] : memref<1x32xf32, #tpu.memory_space<vmem>>, vector<1x32xf32>
    %c0_9 = arith.constant 0 : index
    %c0_10 = arith.constant 0 : index
    %10 = vector.load %arg6[%c0_9, %c0_10] : memref<1x32xf32, #tpu.memory_space<vmem>>, vector<1x32xf32>
    %cst_11 = arith.constant dense<0.000000e+00> : vector<16xf32>
    %11 = vector.multi_reduction <add>, %8, %cst_11 [1] : vector<16x32xf32> to vector<16xf32>
    %12 = vector.shape_cast %11 : vector<16xf32> to vector<16x1xf32>
    %cst_12 = arith.constant 3.200000e+01 : f32
    %13 = vector.broadcast %cst_12 : f32 to vector<16x1xf32>
    %14 = arith.divf %12, %13 : vector<16x1xf32>
    %15 = vector.broadcast %14 : vector<16x1xf32> to vector<16x32xf32>
    %16 = arith.subf %8, %15 : vector<16x32xf32>
    %17 = arith.mulf %16, %16 : vector<16x32xf32>
    %cst_13 = arith.constant dense<0.000000e+00> : vector<16xf32>
    %18 = vector.multi_reduction <add>, %17, %cst_13 [1] : vector<16x32xf32> to vector<16xf32>
    %19 = vector.shape_cast %18 : vector<16xf32> to vector<16x1xf32>
    %cst_14 = arith.constant 3.200000e+01 : f32
    %20 = vector.broadcast %cst_14 : f32 to vector<16x1xf32>
    %21 = arith.divf %19, %20 : vector<16x1xf32>
    %cst_15 = arith.constant 9.99999974E-6 : f32
    %22 = vector.broadcast %cst_15 : f32 to vector<16x1xf32>
    %23 = arith.addf %21, %22 : vector<16x1xf32>
    %24 = math.rsqrt %23 : vector<16x1xf32>
    %25 = vector.broadcast %24 : vector<16x1xf32> to vector<16x32xf32>
    %26 = arith.mulf %16, %25 : vector<16x32xf32>
    %27 = vector.broadcast %9 : vector<1x32xf32> to vector<16x32xf32>
    %28 = arith.mulf %26, %27 : vector<16x32xf32>
    %29 = vector.broadcast %10 : vector<1x32xf32> to vector<16x32xf32>
    %30 = arith.addf %28, %29 : vector<16x32xf32>
    %31 = arith.truncf %30 : vector<16x32xf32> to vector<16x32xbf16>
    %c0_16 = arith.constant 0 : index
    %c0_17 = arith.constant 0 : index
    %32 = vector.load %arg7[%c0_16, %c0_17] : memref<32x128xbf16, #tpu.memory_space<vmem>>, vector<32x128xbf16>
    %cst_18 = arith.constant dense<0.000000e+00> : vector<16x128xf32>
    %33 = tpu.matmul %31, %32, %cst_18 {dimension_numbers = #tpu.dot_dimension_numbers<[1], [0], [0], [1], [0, 0, 1, 1], [], []>} : vector<16x32xbf16>, vector<32x128xbf16>, vector<16x128xf32> -> vector<16x128xf32>
    %c0_19 = arith.constant 0 : index
    %c0_20 = arith.constant 0 : index
    %34 = vector.load %arg8[%c0_19, %c0_20] : memref<1x128xf32, #tpu.memory_space<vmem>>, vector<1x128xf32>
    %35 = vector.broadcast %34 : vector<1x128xf32> to vector<16x128xf32>
    %36 = arith.addf %33, %35 : vector<16x128xf32>
    %cst_21 = arith.constant 5.000000e-01 : f32
    %37 = vector.broadcast %cst_21 : f32 to vector<16x128xf32>
    %38 = arith.mulf %37, %36 : vector<16x128xf32>
    %cst_22 = arith.constant 0.707106769 : f32
    %39 = vector.broadcast %cst_22 : f32 to vector<16x128xf32>
    %40 = arith.mulf %36, %39 : vector<16x128xf32>
    %41 = math.erf %40 : vector<16x128xf32>
    %cst_23 = arith.constant 1.000000e+00 : f32
    %42 = vector.broadcast %cst_23 : f32 to vector<16x128xf32>
    %43 = arith.addf %42, %41 : vector<16x128xf32>
    %44 = arith.mulf %38, %43 : vector<16x128xf32>
    %45 = arith.truncf %44 : vector<16x128xf32> to vector<16x128xbf16>
    %c0_24 = arith.constant 0 : index
    %c0_25 = arith.constant 0 : index
    %46 = vector.load %arg9[%c0_24, %c0_25] : memref<128x32xbf16, #tpu.memory_space<vmem>>, vector<128x32xbf16>
    %cst_26 = arith.constant dense<0.000000e+00> : vector<16x32xf32>
    %47 = tpu.matmul %45, %46, %cst_26 {dimension_numbers = #tpu.dot_dimension_numbers<[1], [0], [0], [1], [0, 0, 1, 1], [], []>} : vector<16x128xbf16>, vector<128x32xbf16>, vector<16x32xf32> -> vector<16x32xf32>
    %c0_27 = arith.constant 0 : index
    %c0_28 = arith.constant 0 : index
    %48 = vector.load %arg10[%c0_27, %c0_28] : memref<1x32xf32, #tpu.memory_space<vmem>>, vector<1x32xf32>
    %49 = vector.broadcast %48 : vector<1x32xf32> to vector<16x32xf32>
    %50 = arith.addf %47, %49 : vector<16x32xf32>
    %51 = arith.addf %8, %50 : vector<16x32xf32>
    %c0_29 = arith.constant 0 : index
    %c0_30 = arith.constant 0 : index
    %52 = vector.load %arg11[%c0_29, %c0_30] : memref<16x32xf32, #tpu.memory_space<vmem>>, vector<16x32xf32>
    tpu.vector_store %arg11[%c0_29, %c0_30], %51 {strides = array<i32>} : memref<16x32xf32, #tpu.memory_space<vmem>>, vector<16x32xf32>,
    return
  }
  func.func @transform_0(%arg0: i32) -> (i32, i32) {
    %c0_i32 = arith.constant 0 : i32
    %c0_i32_0 = arith.constant 0 : i32
    return %arg0, %c0_i32 : i32, i32
  }
  func.func @transform_1(%arg0: i32) -> (i32, i32) {
    %c0_i32 = arith.constant 0 : i32
    %c0_i32_0 = arith.constant 0 : i32
    return %arg0, %c0_i32 : i32, i32
  }
  func.func @transform_2(%arg0: i32) -> (i32, i32) {
    %c0_i32 = arith.constant 0 : i32
    %c0_i32_0 = arith.constant 0 : i32
    %c0_i32_1 = arith.constant 0 : i32
    return %c0_i32, %c0_i32_0 : i32, i32
  }
  func.func @transform_3(%arg0: i32) -> (i32, i32) {
    %c0_i32 = arith.constant 0 : i32
    %c0_i32_0 = arith.constant 0 : i32
    %c0_i32_1 = arith.constant 0 : i32
    return %c0_i32, %c0_i32_0 : i32, i32
  }
  func.func @transform_4(%arg0: i32) -> (i32, i32) {
    %c0_i32 = arith.constant 0 : i32
    %c0_i32_0 = arith.constant 0 : i32
    %c0_i32_1 = arith.constant 0 : i32
    return %c0_i32, %c0_i32_0 : i32, i32
  }
  func.func @transform_5(%arg0: i32) -> (i32, i32) {
    %c0_i32 = arith.constant 0 : i32
    %c0_i32_0 = arith.constant 0 : i32
    %c0_i32_1 = arith.constant 0 : i32
    return %c0_i32, %c0_i32_0 : i32, i32
  }
  func.func @transform_6(%arg0: i32) -> (i32, i32) {
    %c0_i32 = arith.constant 0 : i32
    %c0_i32_0 = arith.constant 0 : i32
    %c0_i32_1 = arith.constant 0 : i32
    return %c0_i32, %c0_i32_0 : i32, i32
  }
  func.func @transform_7(%arg0: i32) -> (i32, i32) {
    %c0_i32 = arith.constant 0 : i32
    %c0_i32_0 = arith.constant 0 : i32
    %c0_i32_1 = arith.constant 0 : i32
    return %c0_i32, %c0_i32_0 : i32, i32
  }
  func.func @transform_8(%arg0: i32) -> (i32, i32) {
    %c0_i32 = arith.constant 0 : i32
    %c0_i32_0 = arith.constant 0 : i32
    %c0_i32_1 = arith.constant 0 : i32
    return %c0_i32, %c0_i32_0 : i32, i32
  }
  func.func @transform_9(%arg0: i32) -> (i32, i32) {
    %c0_i32 = arith.constant 0 : i32
    %c0_i32_0 = arith.constant 0 : i32
    %c0_i32_1 = arith.constant 0 : i32
    return %c0_i32, %c0_i32_0 : i32, i32
  }
  func.func @transform_10(%arg0: i32) -> (i32, i32) {
    %c0_i32 = arith.constant 0 : i32
    %c0_i32_0 = arith.constant 0 : i32
    return %arg0, %c0_i32 : i32, i32
  }
}

</mosaic_0001>

<bundles_post_ra>
// kernel: gpt_forward.8
= control target key start
LH: loop header
LB: loop body
LE: loop exit
PB: predicated region body
PF: predicated region fallthrough
CT: control target
= control target key end

     0   :  { %s494_s15 = smov 0   ;;  %s530_s0 = inlined_call_operand.vmem [shape: bf16[8,8,8], index: 0, kind: input, shape index: {}]   ;;  %s531_s1 = inlined_call_operand.vmem [shape: bf16[8,8,8], index: 1, kind: input, shape index: {}]   ;;  %s532_s2 = inlined_call_operand.vmem [shape: bf16[8,8,8], index: 2, kind: input, shape index: {}]   ;;  %s533_s3 = inlined_call_operand.vmem [shape: f32[8,8], index: 3, kind: input, shape index: {}]   ;;  %s534_s4 = inlined_call_operand.vmem [shape: f32[8,8,8], index: 4, kind: output, shape index: {}]  }
   0x1 LB: > { %s416_s16 = sadd.s32 4294967295, %s465_s15   ;;  %p420_p0 = scmp.ge.s32.totalorder %s465_s15, 1  ;;  %s465_s15 = sphi %s494_s15, %s14_s15  }
   0x2   : > { %p179_p1 = scmp.lt.s32.totalorder %s465_s15, 9 }
   0x4   : > { %p180_p2 = pnand %p420_p0, %p179_p1 }
   0x5   : > { %p211_p3 = scmp.lt.s32.totalorder (!%p180_p2), %s416_s16, 7  ;;  %v467_v0 = vmov (!%p180_p2), 0.0   ;;  %vm468_vm0 = vmmov (!%p180_p2), 0   ;;  %vm232_vm1 = vcmask (!%p180_p2), 64512   ;;  %v231_v4 = vld [vmem:[%s533_s3] sm:$0xff] (!%p180_p2)  ;;  %vm294_vm2 = vcmask (!%p180_p2), 1043456  }
   0x6   : > { %183 = sbr.rel (%p180_p2) target bundleno = 770 (0x302), region = 36  ;;  %433 = vmatprep.subr.bf16.mxu0 (!%p180_p2), %v467_v0  ;;  %435 = vmatprep.mubr.msk.bf16.mxu0 (!%p180_p2), %vm468_vm0, %v467_v0 }
   0x7   : > { %439 = vmatprep.subr.bf16.mxu1 (!%p180_p2), %v467_v0  ;;  %441 = vmatprep.mubr.msk.bf16.mxu1 (!%p180_p2), %vm468_vm0, %v467_v0 }
   0xd   : > { %s536_s16 = smov (!%p211_p3, %s416_s16), 7 }
   0xe   : > { %s421_s17 = sshll.u32 %s536_s16, 2  ;;  %s424_s29 = sshll.u32 %s536_s16, 3 }
   0xf   : > { %s218_s20 = scalar_lea.vmem %s531_s1, %s421_s17  ;;  %s214_s23 = scalar_lea.vmem %s530_s0, %s421_s17 }
  0x10   : > { %v229_v1 = vld [vmem:[%s218_s20] sm:$0xf]  ;;  %s222_s28 = scalar_lea.vmem %s532_s2, %s421_s17  ;;  %s226_s6 = scalar_lea.vmem %s534_s4, %s424_s29 }
  0x11   : > { %v237_v2 = vsel %vm232_vm1, %v229_v1, 0  ;;  %v228_v3 = vld [vmem:[%s214_s23] sm:$0xf] }
  0x12   : > { %434 = vmatpush3.bf16.xpose.msra.mxu0 %v237_v2  ;;  %v230_v16 = vld [vmem:[%s222_s28] sm:$0xf] }
  0x13   : > { %v296_v17 = vsel %vm294_vm2, %v230_v16, 0 }
  0x14   : > { %440 = vmatpush3.bf16.msra.mxu1 %v296_v17 }
  0x19   : > { %436 = vmatmul.mubr.msk.bf16.vlgmr.msra.gmra.mrb[0].mxu0 %vm232_vm1, %v228_v3 }
  0xec   : > { %v273_v5 = vpop.f32.mrb[0].mxu0 }
  0xed   : > { %v274_v6 = vadd.f32 %v273_v5, %v231_v4  ;;  %v437_v7 = vpop.f32.mrb[1].mxu0 }
  0xee   : > { %v276_v8 = vpop.f32.mrb[2].mxu0 }
  0xef   : > { %v438_v9 = vpop.f32.mrb[3].mxu0  ;;  %v279_v10 = vsel %vm232_vm1, %v274_v6, -inf }
  0xf0   : > { %280 = vmax.xlane.f32.xlu0 %v279_v10 }
 0x17d   : > { %v281_v11 = vpop.xlane.xlu0 %280 }
 0x17e   : > { %v282_v12 = vsub.f32 %v274_v6, %v281_v11 }
 0x180   : > { %v283_v13 = vmul.f32 1.442695, %v282_v12 }
 0x182   : > { %455 = vpow2.f32 %v283_v13 }
 0x18c   : > { %v456_v14 = vpop.eup %455 }
 0x18d   : > { %v285_v15 = vsel %vm232_vm1, %v456_v14, 0.0 }
 0x18e   : > { %286 = vadd.xlane.f32.xlu0 %v285_v15 }
 0x21b   : > { %v287_v18 = vpop.xlane.xlu0 %286 }
 0x21c   : > { %457 = vrcp.f32 %v287_v18 }
 0x226   : > { %v458_v19 = vpop.eup %457 }
 0x227   : > { %v289_v20 = vmul.f32 %v458_v19, %v456_v14 }
 0x229   : > { %v290_v21 = vpack.c.bf16 %v289_v20, %v289_v20 }
 0x22b   : > { %442 = vmatmul.mubr.msk.bf16.vlgmr.msra.gmra.mrb[0].mxu1 %vm232_vm1, %v290_v21 }
 0x2fe   : > { %v332_v22 = vpop.f32.mrb[0].mxu1 }
 0x2ff   : > { %338 = vst.msk [vmem:[%s226_s6] sm:$0xff] %vm232_vm1, %v332_v22  ;;  %v443_v23 = vpop.f32.mrb[1].mxu1 }
 0x300   : > { %v335_v24 = vpop.f32.mrb[2].mxu1 }
 0x301   : > { %v444_v25 = vpop.f32.mrb[3].mxu1 }
 0x302 PF: > { %s14_s15 = sadd.s32 1, %s465_s15  }
 0x303   : > { %p11_p4 = scmp.ge.s32.totalorder %s14_s15, 10  }
 0x305   :  { %13 = sbr.rel (!%p11_p4) target bundleno = 1 (0x1), region = 72 }

// kernel: gpt_forward.7
= control target key start
LH: loop header
LB: loop body
LE: loop exit
PB: predicated region body
PF: predicated region fallthrough
CT: control target
= control target key end

     0   :  { %vm25_vm0 = vcmask 261120   ;;  %v169_v15 = vmov 0.0   ;;  %vm170_vm1 = vmmov 0   ;;  %vm137_vm2 = vcmask 785408   ;;  %s233_s0 = inlined_call_operand.vmem [shape: f32[16,32], index: 0, kind: input, shape index: {}]   ;;  %s234_s3 = inlined_call_operand.vmem [shape: bf16[32,96], index: 3, kind: input, shape index: {}]   ;;  %s235_s1 = inlined_call_operand.vmem [shape: f32[1,32], index: 1, kind: input, shape index: {}]   ;;  %s236_s2 = inlined_call_operand.vmem [shape: f32[1,32], index: 2, kind: input, shape index: {}]   ;;  %s237_s4 = inlined_call_operand.vmem [shape: f32[1,96], index: 4, kind: input, shape index: {}]   ;;  %s238_s5 = inlined_call_operand.vmem [shape: f32[16,96], index: 5, kind: output, shape index: {}]  }
   0x1   :  { %v21_v0 = vld [vmem:[%s233_s0] sm:$0xff]  ;;  %v22_v1 = vld [vmem:[%s233_s0 + $0x8] sm:$0xff]  ;;  %153 = vmatprep.subr.bf16.mxu0 %v169_v15  ;;  %157 = vmatprep.mubr.msk.bf16.mxu0 %vm170_vm1, %v169_v15 }
   0x2   :  { %v26_v2 = vsel %vm25_vm0, %v21_v0, 0.0  ;;  %v29_v3 = vsel %vm25_vm0, %v22_v1, 0.0  ;;  %v163_v14 = vld [vmem:[%s234_s3] sm:$0xff]   ;;  %v164_v16 = vld [vmem:[%s234_s3 + $0x8] sm:$0xff]  }
   0x3   :  { %27 = vadd.xlane.f32.xlu0 %v26_v2  ;;  %154 = vmatpush3.bf16.msra.mxu0 %v163_v14  ;;  %v144_v25 = vld [vmem:[%s235_s1] ss:$0 sm:$0xff] }
   0x4   :  { %155 = vmatprep.subr.bf16.mxu0 %v169_v15  ;;  %v145_v29 = vld [vmem:[%s236_s2] ss:$0 sm:$0xff] }
   0x5   :  { %v146_v34 = vld [vmem:[%s237_s4] ss:$0 sm:$0xff] }
   0x7   :  { %30 = vadd.xlane.f32.xlu0 %v29_v3  ;;  %156 = vmatpush3.bf16.msra.mxu0 %v164_v16 }
  0x90   :  { %v28_v4 = vpop.xlane.xlu0 %27 }
  0x91   :  { %v33_v5 = vmul.f32 0.03125, %v28_v4 }
  0x93   :  { %v35_v6 = vsub.f32 %v21_v0, %v33_v5 }
  0x94   :  { %v31_v7 = vpop.xlane.xlu0 %30 }
  0x95   :  { %v34_v8 = vmul.f32 0.03125, %v31_v7  ;;  %v37_v9 = vmul.f32 %v35_v6, %v35_v6 }
  0x97   :  { %v36_v10 = vsub.f32 %v22_v1, %v34_v8  ;;  %v39_v11 = vsel %vm25_vm0, %v37_v9, 0.0 }
  0x98   :  { %40 = vadd.xlane.f32.xlu1 %v39_v11 }
  0x99   :  { %v38_v12 = vmul.f32 %v36_v10, %v36_v10 }
  0x9b   :  { %v42_v13 = vsel %vm25_vm0, %v38_v12, 0.0 }
  0x9c   :  { %43 = vadd.xlane.f32.xlu1 %v42_v13 }
 0x125   :  { %v41_v17 = vpop.xlane.xlu1 %40 }
 0x126   :  { %v45_v18 = vmul.f32 0.03125, %v41_v17 }
 0x128   :  { %v47_v19 = vadd.f32 1e-05, %v45_v18 }
 0x129   :  { %v44_v20 = vpop.xlane.xlu1 %43 }
 0x12a   :  { %165 = vrsqrt.f32 %v47_v19  ;;  %v46_v21 = vmul.f32 0.03125, %v44_v20 }
 0x12c   :  { %v48_v22 = vadd.f32 1e-05, %v46_v21 }
 0x12e   :  { %167 = vrsqrt.f32 %v48_v22 }
 0x134   :  { %v166_v23 = vpop.eup %165 }
 0x135   :  { %v51_v24 = vmul.f32 %v166_v23, %v35_v6 }
 0x137   :  { %v59_v28 = vmul.f32 %v144_v25, %v51_v24 }
 0x138   :  { %v168_v26 = vpop.eup %167 }
 0x139   :  { %v52_v27 = vmul.f32 %v168_v26, %v36_v10  ;;  %v67_v31 = vadd.f32 %v145_v29, %v59_v28 }
 0x13b   :  { %v60_v30 = vmul.f32 %v144_v25, %v52_v27 }
 0x13d   :  { %v68_v32 = vadd.f32 %v145_v29, %v60_v30 }
 0x13f   :  { %v69_v33 = vpack.c.bf16 %v68_v32, %v67_v31 }
 0x141   :  { %158 = vmatmul.mubr.msk.bf16.vlgmr.msra.gmra.mrb[0].mxu0 %vm25_vm0, %v69_v33 }
 0x214   :  { %v130_v35 = vpop.f32.mrb[0].mxu0 }
 0x215   :  { %v131_v36 = vadd.f32 %v146_v34, %v130_v35  ;;  %v159_v37 = vpop.f32.mrb[1].mxu0 }
 0x216   :  { %v133_v38 = vpop.f32.mrb[2].mxu0 }
 0x217   :  { %138 = vst.msk [vmem:[%s238_s5] sm:$0xff] %vm137_vm2, %v131_v36  ;;  %v134_v39 = vadd.f32 %v146_v34, %v133_v38  ;;  %v160_v40 = vpop.f32.mrb[3].mxu0 }
 0x219   :  { %139 = vst.msk [vmem:[%s238_s5 + $0x8] sm:$0xff] %vm137_vm2, %v134_v39 }

// kernel: gpt_forward.13
= control target key start
LH: loop header
LB: loop body
LE: loop exit
PB: predicated region body
PF: predicated region fallthrough
CT: control target
= control target key end

     0   :  { %vm27_vm0 = vcmask 261120   ;;  %s270_s0 = inlined_call_operand.vmem [shape: f32[16,32], index: 0, kind: input, shape index: {}]   ;;  %s271_s1 = inlined_call_operand.vmem [shape: f32[1,32], index: 1, kind: input, shape index: {}]   ;;  %s272_s2 = inlined_call_operand.vmem [shape: f32[1,32], index: 2, kind: input, shape index: {}]   ;;  %s273_s3 = inlined_call_operand.vmem [shape: bf16[32,128], index: 3, kind: input, shape index: {}]   ;;  %s274_s4 = inlined_call_operand.hbm [shape: f32[16,128], index: 4, kind: output, shape index: {}]  }
   0x1   :  { %v23_v0 = vld [vmem:[%s270_s0] sm:$0xff]  ;;  %v24_v1 = vld [vmem:[%s270_s0 + $0x8] sm:$0xff] }
   0x2   :  { %v28_v2 = vsel %vm27_vm0, %v23_v0, 0.0 }
   0x3   :  { %29 = vadd.xlane.f32.xlu0 %v28_v2 }
   0x4   :  { %9 = vsyncpa [#allocation4], 0  ;;  %v31_v3 = vsel %vm27_vm0, %v24_v1, 0.0  ;;  %v174_v14 = vld [vmem:[%s273_s3] sm:$0xff]   ;;  %v204_v15 = vmov 0.0   ;;  %v175_v16 = vld [vmem:[%s273_s3 + $0x8] sm:$0xff]  }
   0x5   :  { %161 = vmatprep.subr.bf16.mxu0 %v204_v15  ;;  %vm205_vm1 = vmmov 0   ;;  %v153_v25 = vld [vmem:[%s271_s1] ss:$0 sm:$0xff]  ;;  %s206_s25 = smov [#allocation3]  }
   0x6   :  { %162 = vmatpush3.bf16.msra.mxu0 %v174_v14  ;;  %165 = vmatprep.mubr.msk.bf16.mxu0 %vm205_vm1, %v204_v15  ;;  %v154_v29 = vld [vmem:[%s272_s2] ss:$0 sm:$0xff]  ;;  %s142_s26 = sshll.u32 %s206_s25, 4  ;;  %s143_s26 = int_to_ptr.vmem [resolvable:$true] %s142_s26 }
   0x7   :  { %32 = vadd.xlane.f32.xlu0 %v31_v3  ;;  %163 = vmatprep.subr.bf16.mxu0 %v204_v15  ;;  %s180_s1 = scalar_lea.vmem %s143_s26, 256  ;;  %p185_p1 = scmp.lt.s32.totalorder %s143_s26, %s143_s26 }
   0x8   :  { %p181_p0 = scmp.ne.s32.totalorder %s143_s26, %s180_s1  ;;  %p186_p2 = scmp.lt.s32.totalorder %s180_s1, %s180_s1 }
   0xa   :  { %164 = vmatpush3.bf16.msra.mxu0 %v175_v16  ;;  %p187_p3 = por %p186_p2, %p185_p1 }
   0xc   :  { %p188_p4 = pnand %p187_p3, %p181_p0 }
  0x90   :  { %v30_v4 = vpop.xlane.xlu0 %29 }
  0x91   :  { %v35_v5 = vmul.f32 0.03125, %v30_v4 }
  0x93   :  { %v37_v6 = vsub.f32 %v23_v0, %v35_v5 }
  0x94   :  { %v33_v7 = vpop.xlane.xlu0 %32 }
  0x95   :  { %v36_v8 = vmul.f32 0.03125, %v33_v7  ;;  %v39_v9 = vmul.f32 %v37_v6, %v37_v6 }
  0x97   :  { %v38_v10 = vsub.f32 %v24_v1, %v36_v8  ;;  %v41_v11 = vsel %vm27_vm0, %v39_v9, 0.0 }
  0x98   :  { %42 = vadd.xlane.f32.xlu1 %v41_v11 }
  0x99   :  { %v40_v12 = vmul.f32 %v38_v10, %v38_v10 }
  0x9b   :  { %v44_v13 = vsel %vm27_vm0, %v40_v12, 0.0 }
  0x9c   :  { %45 = vadd.xlane.f32.xlu1 %v44_v13 }
 0x125   :  { %v43_v17 = vpop.xlane.xlu1 %42 }
 0x126   :  { %v47_v18 = vmul.f32 0.03125, %v43_v17 }
 0x128   :  { %v49_v19 = vadd.f32 1e-05, %v47_v18 }
 0x129   :  { %v46_v20 = vpop.xlane.xlu1 %45 }
 0x12a   :  { %176 = vrsqrt.f32 %v49_v19  ;;  %v48_v21 = vmul.f32 0.03125, %v46_v20 }
 0x12c   :  { %v50_v22 = vadd.f32 1e-05, %v48_v21 }
 0x12e   :  { %178 = vrsqrt.f32 %v50_v22 }
 0x134   :  { %v177_v23 = vpop.eup %176 }
 0x135   :  { %v53_v24 = vmul.f32 %v177_v23, %v37_v6 }
 0x137   :  { %v61_v27 = vmul.f32 %v153_v25, %v53_v24 }
 0x138   :  { %v179_v26 = vpop.eup %178 }
 0x139   :  { %v54_v28 = vmul.f32 %v179_v26, %v38_v10  ;;  %v69_v31 = vadd.f32 %v154_v29, %v61_v27 }
 0x13b   :  { %v62_v30 = vmul.f32 %v153_v25, %v54_v28 }
 0x13d   :  { %v70_v32 = vadd.f32 %v154_v29, %v62_v30 }
 0x13f   :  { %v71_v33 = vpack.c.bf16 %v70_v32, %v69_v31 }
 0x141   :  { %72 = vst.msk [vmem:[#allocation2] sm:$0xff] %vm27_vm0, %v71_v33 }
 0x148   :  { %v73_v34 = vld [vmem:[#allocation2] sm:$0xff] }
 0x149   :  { %166 = vmatmul.mubr.msk.bf16.vlgmr.msra.gmra.mrb[0].mxu0 %vm27_vm0, %v73_v34 }
 0x21c   :  { %v128_v35 = vpop.f32.mrb[0].mxu0 }
 0x21d   :  { %135 = vst [vmem:[#allocation3] sm:$0xff] %v128_v35  ;;  %v167_v36 = vpop.f32.mrb[1].mxu0 }
 0x21e   :  { %v131_v37 = vpop.f32.mrb[2].mxu0 }
 0x21f   :  { %136 = vst [vmem:[#allocation3 + $0x8] sm:$0xff] %v131_v37  ;;  %v168_v38 = vpop.f32.mrb[3].mxu0 }
 0x220   :  { %191 = shalt.err (!%p188_p4)
}
 0x221   :  { %s192_s28 = scalar_lea.hbm %s274_s4, 256 }
 0x222   :  { %p193_p5 = scmp.ne.s32.totalorder %s274_s4, %s192_s28  ;;  %p196_p6 = scmp.lt.u32.totalorder %s192_s28, %s274_s4 }
 0x224   :  { %p198_p7 = pnand %p196_p6, %p193_p5 }
 0x226   :  { %201 = shalt.err (!%p198_p7)
}
 0x227   :  { %s207_s7 = smov 128   ;;  %s208_s8 = smov 8  }
 0x228   :  { %148 = dma.vmem_to_hbm [thread:$0]  %s143_s26, 256, %s274_s4, [#allocation4], %s207_s7, %s207_s7, %s208_s8  }
 0x229   :  { %202 = dma.done.wait [#allocation4], 256  }
 0x22a   :  { %203 = vsyncadd [#allocation4], 4294967040 }
 0x22b   :  { %152 = vsyncpa [#allocation4], 1 }

// kernel: gpt_forward.9
= control target key start
LH: loop header
LB: loop body
LE: loop exit
PB: predicated region body
PF: predicated region fallthrough
CT: control target
= control target key end

     0   :  { %v447_v0 = vmov 0.0   ;;  %vm448_vm0 = vmmov 0   ;;  %vm64_vm1 = vcmask 261120   ;;  %s606_s2 = inlined_call_operand.vmem [shape: bf16[32,32], index: 2, kind: input, shape index: {}]   ;;  %s607_s1 = inlined_call_operand.vmem [shape: f32[16,32], index: 1, kind: input, shape index: {}]   ;;  %s608_s3 = inlined_call_operand.vmem [shape: f32[1,32], index: 3, kind: input, shape index: {}]   ;;  %s609_s0 = inlined_call_operand.vmem [shape: f32[16,32], index: 0, kind: input, shape index: {}]   ;;  %s610_s6 = inlined_call_operand.vmem [shape: bf16[32,128], index: 6, kind: input, shape index: {}]   ;;  %s611_s8 = inlined_call_operand.vmem [shape: bf16[128,32], index: 8, kind: input, shape index: {}]   ;;  %s612_s4 = inlined_call_operand.vmem [shape: f32[1,32], index: 4, kind: input, shape index: {}]   ;;  %s613_s5 = inlined_call_operand.vmem [shape: f32[1,32], index: 5, kind: input, shape index: {}]   ;;  %s614_s7 = inlined_call_operand.vmem [shape: f32[1,128], index: 7, kind: input, shape index: {}]   ;;  %s615_s9 = inlined_call_operand.vmem [shape: f32[1,32], index: 9, kind: input, shape index: {}]   ;;  %s616_s10 = inlined_call_operand.vmem [shape: f32[16,32], index: 10, kind: output, shape index: {}]  }
   0x1   :  { %389 = vmatprep.subr.bf16.mxu1 %v447_v0  ;;  %v427_v1 = vld [vmem:[%s606_s2] sm:$0xff]   ;;  %393 = vmatprep.mubr.msk.bf16.mxu1 %vm448_vm0, %v447_v0  ;;  %v428_v2 = vld [vmem:[%s606_s2 + $0x8] sm:$0xff]   ;;  %v433_v50 = vld [vmem:[%s611_s8 + $0x10] sm:$0xff]  }
   0x2   :  { %405 = vmatprep.subr.bf16.mxu0 %v447_v0  ;;  %421 = vmatprep.mubr.msk.bf16.mxu0 %vm448_vm0, %v447_v0  ;;  %v38_v3 = vld [vmem:[%s607_s1] sm:$0xff]  ;;  %v39_v4 = vld [vmem:[%s607_s1 + $0x8] sm:$0xff]  ;;  %v434_v51 = vld [vmem:[%s611_s8 + $0x18] sm:$0xff]  }
   0x3   :  { %390 = vmatpush3.bf16.msra.mxu1 %v427_v1  ;;  %v40_v5 = vpack.c.bf16 %v39_v4, %v38_v3  ;;  %v355_v6 = vld [vmem:[%s608_s3] ss:$0 sm:$0xff]  ;;  %v37_v11 = vld [vmem:[%s609_s0 + $0x8] sm:$0xff]  ;;  %v437_v54 = vld [vmem:[%s611_s8 + $0x30] sm:$0xff]  }
   0x4   :  { %391 = vmatprep.subr.bf16.mxu1 %v447_v0  ;;  %v36_v7 = vld [vmem:[%s609_s0] sm:$0xff]  ;;  %v430_v30 = vld [vmem:[%s610_s6 + $0x8] sm:$0xff]   ;;  %v438_v55 = vld [vmem:[%s611_s8 + $0x38] sm:$0xff]  }
   0x5   :  { %v429_v29 = vld [vmem:[%s610_s6] sm:$0xff]   ;;  %v432_v32 = vld [vmem:[%s611_s8 + $0x8] sm:$0xff]  }
   0x6   :  { %v431_v31 = vld [vmem:[%s611_s8] sm:$0xff]   ;;  %v436_v53 = vld [vmem:[%s611_s8 + $0x28] sm:$0xff]  }
   0x7   :  { %392 = vmatpush3.bf16.msra.mxu1 %v428_v2  ;;  %406 = vmatpush3.bf16.msra.mxu0 %v431_v31  ;;  %v359_v41 = vld [vmem:[%s612_s4] ss:$0 sm:$0xff] }
   0x8   :  { %397 = vmatprep.subr.bf16.mxu1 %v447_v0  ;;  %407 = vmatprep.subr.bf16.mxu0 %v447_v0  ;;  %v360_v45 = vld [vmem:[%s613_s5] ss:$0 sm:$0xff] }
   0x9   :  { %v435_v52 = vld [vmem:[%s611_s8 + $0x20] sm:$0xff]  }
   0xa   :  { %394 = vmatmul.mubr.msk.bf16.vlgmr.msra.gmra.mrb[0].mxu1 %vm64_vm1, %v40_v5  ;;  %v361_v56 = vld [vmem:[%s614_s7] ss:$0 sm:$0xff] }
   0xb   :  { %401 = vmatprep.mubr.msk.bf16.mxu1 %vm448_vm0, %v447_v0  ;;  %398 = vmatpush3.bf16.msra.mxu1 %v429_v29 }
   0xc   :  { %399 = vmatprep.subr.bf16.mxu1 %v447_v0  ;;  %408 = vmatpush3.bf16.msra.mxu0 %v432_v32 }
   0xd   :  { %409 = vmatprep.subr.bf16.mxu0 %v447_v0 }
   0xf   :  { %400 = vmatpush3.bf16.msra.mxu1 %v430_v30 }
  0x10   :  { %410 = vmatpush3.bf16.msra.mxu0 %v433_v50 }
  0x11   :  { %411 = vmatprep.subr.bf16.mxu0 %v447_v0 }
  0x14   :  { %412 = vmatpush3.bf16.msra.mxu0 %v434_v51 }
  0x15   :  { %413 = vmatprep.subr.bf16.mxu0 %v447_v0 }
  0x18   :  { %414 = vmatpush3.bf16.msra.mxu0 %v435_v52 }
  0x19   :  { %415 = vmatprep.subr.bf16.mxu0 %v447_v0 }
  0x1c   :  { %416 = vmatpush3.bf16.msra.mxu0 %v436_v53 }
  0x1d   :  { %417 = vmatprep.subr.bf16.mxu0 %v447_v0 }
  0x20   :  { %418 = vmatpush3.bf16.msra.mxu0 %v437_v54 }
  0x21   :  { %419 = vmatprep.subr.bf16.mxu0 %v447_v0 }
  0x24   :  { %420 = vmatpush3.bf16.msra.mxu0 %v438_v55 }
  0xdd   :  { %v102_v8 = vpop.f32.mrb[0].mxu1 }
  0xde   :  { %v103_v9 = vadd.f32 %v355_v6, %v102_v8  ;;  %v395_v10 = vpop.f32.mrb[1].mxu1 }
  0xdf   :  { %v105_v12 = vpop.f32.mrb[2].mxu1  ;;  %v365_v10 = vld [vmem:[%s615_s9] ss:$0 sm:$0xff] }
  0xe0   :  { %v533_v13 = vadd.f32 %v103_v9, %v36_v7  ;;  %v106_v14 = vadd.f32 %v355_v6, %v105_v12  ;;  %v396_v15 = vpop.f32.mrb[3].mxu1 }
  0xe2   :  { %v535_v16 = vadd.f32 %v106_v14, %v37_v11  ;;  %v113_v17 = vsel %vm64_vm1, %v533_v13, 0.0 }
  0xe3   :  { %114 = vadd.xlane.f32.xlu0 %v113_v17 }
  0xe4   :  { %v116_v18 = vsel %vm64_vm1, %v535_v16, 0.0 }
  0xe7   :  { %117 = vadd.xlane.f32.xlu0 %v116_v18 }
 0x170   :  { %v115_v19 = vpop.xlane.xlu0 %114 }
 0x171   :  { %v120_v20 = vmul.f32 0.03125, %v115_v19 }
 0x173   :  { %v122_v21 = vsub.f32 %v533_v13, %v120_v20 }
 0x174   :  { %v118_v22 = vpop.xlane.xlu0 %117 }
 0x175   :  { %v121_v23 = vmul.f32 0.03125, %v118_v22  ;;  %v124_v24 = vmul.f32 %v122_v21, %v122_v21 }
 0x177   :  { %v123_v25 = vsub.f32 %v535_v16, %v121_v23  ;;  %v126_v26 = vsel %vm64_vm1, %v124_v24, 0.0 }
 0x178   :  { %127 = vadd.xlane.f32.xlu1 %v126_v26 }
 0x179   :  { %v125_v27 = vmul.f32 %v123_v25, %v123_v25 }
 0x17b   :  { %v129_v28 = vsel %vm64_vm1, %v125_v27, 0.0 }
 0x17c   :  { %130 = vadd.xlane.f32.xlu1 %v129_v28 }
 0x205   :  { %v128_v33 = vpop.xlane.xlu1 %127 }
 0x206   :  { %v132_v34 = vmul.f32 0.03125, %v128_v33 }
 0x208   :  { %v134_v35 = vadd.f32 1e-05, %v132_v34 }
 0x209   :  { %v131_v36 = vpop.xlane.xlu1 %130 }
 0x20a   :  { %439 = vrsqrt.f32 %v134_v35  ;;  %v133_v37 = vmul.f32 0.03125, %v131_v36 }
 0x20c   :  { %v135_v38 = vadd.f32 1e-05, %v133_v37 }
 0x20e   :  { %441 = vrsqrt.f32 %v135_v38 }
 0x214   :  { %v440_v39 = vpop.eup %439 }
 0x215   :  { %v138_v40 = vmul.f32 %v440_v39, %v122_v21 }
 0x217   :  { %v146_v43 = vmul.f32 %v359_v41, %v138_v40 }
 0x218   :  { %v442_v42 = vpop.eup %441 }
 0x219   :  { %v139_v44 = vmul.f32 %v442_v42, %v123_v25  ;;  %v154_v47 = vadd.f32 %v360_v45, %v146_v43 }
 0x21b   :  { %v147_v46 = vmul.f32 %v359_v41, %v139_v44 }
 0x21d   :  { %v155_v48 = vadd.f32 %v360_v45, %v147_v46 }
 0x21f   :  { %v156_v49 = vpack.c.bf16 %v155_v48, %v154_v47 }
 0x221   :  { %402 = vmatmul.mubr.msk.bf16.vlgmr.msra.gmra.mrb[4].mxu1 %vm64_vm1, %v156_v49 }
 0x2f4   :  { %v217_v57 = vpop.f32.mrb[4].mxu1 }
 0x2f5   :  { %v218_v58 = vadd.f32 %v361_v56, %v217_v57  ;;  %v403_v59 = vpop.f32.mrb[5].mxu1 }
 0x2f6   :  { %v220_v60 = vpop.f32.mrb[6].mxu1 }
 0x2f7   :  { %v226_v61 = vmul.f32 0.70710677, %v218_v58  ;;  %v221_v62 = vadd.f32 %v361_v56, %v220_v60  ;;  %v404_v63 = vpop.f32.mrb[7].mxu1  ;;  %v224_v4 = vmul.f32 0.5, %v218_v58 }
 0x2f9   :  { %443 = verf.f32 %v226_v61  ;;  %v227_v1 = vmul.f32 0.70710677, %v221_v62  ;;  %v225_v5 = vmul.f32 0.5, %v221_v62 }
 0x2fb   :  { %445 = verf.f32 %v227_v1 }
 0x303   :  { %v444_v0 = vpop.eup %443 }
 0x304   :  { %v230_v2 = vadd.f32 1.0, %v444_v0 }
 0x305   :  { %v446_v3 = vpop.eup %445 }
 0x306   :  { %v231_v6 = vadd.f32 1.0, %v446_v3  ;;  %v232_v7 = vmul.f32 %v230_v2, %v224_v4 }
 0x308   :  { %v233_v8 = vmul.f32 %v231_v6, %v225_v5 }
 0x30a   :  { %v234_v9 = vpack.c.bf16 %v233_v8, %v232_v7 }
 0x30c   :  { %422 = vmatmul.mubr.bf16.vlgmr.msra.gmra.mrb[0].mxu0 %v234_v9 }
 0x3df   :  { %v340_v11 = vpop.f32.mrb[0].mxu0 }
 0x3e0   :  { %v341_v12 = vadd.f32 %v365_v10, %v340_v11  ;;  %v423_v14 = vpop.f32.mrb[1].mxu0 }
 0x3e1   :  { %v343_v15 = vpop.f32.mrb[2].mxu0 }
 0x3e2   :  { %v347_v17 = vadd.f32 %v341_v12, %v533_v13  ;;  %v344_v18 = vadd.f32 %v365_v10, %v343_v15  ;;  %v424_v19 = vpop.f32.mrb[3].mxu0 }
 0x3e4   :  { %349 = vst.msk [vmem:[%s616_s10] sm:$0xff] %vm64_vm1, %v347_v17  ;;  %v348_v20 = vadd.f32 %v344_v18, %v535_v16 }
 0x3e6   :  { %350 = vst.msk [vmem:[%s616_s10 + $0x8] sm:$0xff] %vm64_vm1, %v348_v20 }

</bundles_post_ra>
